<compile_context>
chip_gen: v5e
topology: v5e:2x2
jax: 0.10.0
libtpu: 0.0.40
codegen_flags: <defaults>
</compile_context>

<pallas_src>
import functools

import jax
import jax.numpy as jnp
from jax.experimental import pallas as pl
from jax.experimental.pallas import tpu as pltpu

GAMMA = 2.0  # gamma == 2 -> squares via multiplies, no pow transcendental
EPS = 1e-8


def _round_up(x, m):
    return ((x + m - 1) // m) * m


def _focal_loss_kernel(x_ref, t_ref, o_ref, *, n_valid, inv_n_pos, inv_n_neg):
    i = pl.program_id(0)

    @pl.when(i == 0)
    def _init():
        o_ref[...] = jnp.zeros_like(o_ref)

    x = x_ref[...].astype(jnp.float32)      # (C, TILE_N) logits, classes on sublanes
    t = t_ref[...]                          # (1, TILE_N) int32 target class ids
    C, TN = x.shape

    # softmax over the class (sublane) axis
    m = jnp.max(x, axis=0, keepdims=True)               # (1, TN)
    e = jnp.exp(x - m)                                   # (C, TN)   N*C exps
    s = jnp.sum(e, axis=0, keepdims=True)                # (1, TN)
    inv_s = pl.reciprocal(s, approx=False)               # N reciprocals (exact)
    p = e * inv_s                                        # (C, TN)

    # one-hot mask: class index lives on the sublane axis
    row = jax.lax.broadcasted_iota(jnp.int32, (C, TN), 0)
    pos_mask = row == t                                  # (C, TN) bool

    # negative term over the non-target entries: -p^2 * log(1 - p + eps)
    neg_term = -(p * p) * jnp.log(1.0 - p + EPS)         # N*C logs
    neg_col = jnp.sum(jnp.where(pos_mask, 0.0, neg_term),
                      axis=0, keepdims=True)             # (1, TN)

    # positive term only at the target entry of each row (N logs, not N*C):
    p_t = jnp.sum(jnp.where(pos_mask, p, 0.0), axis=0, keepdims=True)   # (1, TN)
    one_minus_pt = 1.0 - p_t
    pos_term = -(one_minus_pt * one_minus_pt) * jnp.log(p_t + EPS)      # (1, TN)

    # mask out padded columns (lanes beyond the true batch size)
    col = jax.lax.broadcasted_iota(jnp.int32, (1, TN), 1) + i * TN
    valid = col < n_valid

    contrib = jnp.where(valid,
                        neg_col * inv_n_neg + pos_term * inv_n_pos,
                        0.0)
    o_ref[...] += jnp.sum(contrib)


def focal_loss(inputs, targets, *, tile_n=4096):
    """inputs: (N, C) logits (any float dtype); targets: (N,) int class ids -> f32 scalar."""
    N, C = inputs.shape

    # Lane-dense layout: classes on sublanes, batch on the 128-wide lane axis.
    # Keep the source dtype in HBM (bf16 stays bf16); cast to f32 inside the kernel.
    x_t = inputs.T                                       # (C, N)
    t_row = targets.reshape(1, N).astype(jnp.int32)      # (1, N)

    tile_n = max(128, min(tile_n, _round_up(N, 128)))    # lane-axis tile, mult of 128
    n_pad = _round_up(N, tile_n)
    if n_pad != N:
        x_t = jnp.pad(x_t, ((0, 0), (0, n_pad - N)))
        t_row = jnp.pad(t_row, ((0, 0), (0, n_pad - N)))
    grid = (n_pad // tile_n,)

    kernel = functools.partial(
        _focal_loss_kernel,
        n_valid=N,
        inv_n_pos=1.0 / N,               # one positive entry per row
        inv_n_neg=1.0 / (N * (C - 1)),   # C-1 negative entries per row
    )

    # TODO(synk): on v7x, split the reduction into two per-TensorCore partials
    # (leading size-2 parallel grid axis) and add them in the wrapper.
    out = pl.pallas_call(
        kernel,
        out_shape=jax.ShapeDtypeStruct((1, 1), jnp.float32),
        grid=grid,
        in_specs=[
            pl.BlockSpec((C, tile_n), lambda i: (0, i)),     # logits tile (C, TILE_N)
            pl.BlockSpec((1, tile_n), lambda i: (0, i)),     # targets tile (1, TILE_N)
        ],
        out_specs=pl.BlockSpec((1, 1), lambda i: (0, 0)),    # resident accumulator
        compiler_params=pltpu.CompilerParams(
            dimension_semantics=("arbitrary",)),
        cost_estimate=pl.CostEstimate(
            flops=20 * n_pad * C,
            transcendentals=2 * n_pad * C + 2 * n_pad,
            bytes_accessed=int(x_t.dtype.itemsize) * n_pad * C + 4 * n_pad + 4),
    )(x_t, t_row)
    return out[0, 0]


def focal_loss_ref(inputs, targets):
    N, C = inputs.shape
    p = jax.nn.softmax(inputs.astype(jnp.float32), axis=1)
    pos_mask = jax.nn.one_hot(targets, C, dtype=jnp.bool_)
    pos_term = -((1.0 - p) ** GAMMA) * jnp.log(p + EPS)
    neg_term = -(p ** GAMMA) * jnp.log(1.0 - p + EPS)
    pos_sum = jnp.sum(jnp.where(pos_mask, pos_term, 0.0))
    neg_sum = jnp.sum(jnp.where(pos_mask, 0.0, neg_term))
    return neg_sum / (N * (C - 1)) + pos_sum / N


if __name__ == "__main__":
    class_num = 9
    N = 300  # not a multiple of the tile -> exercises padding/masking + multi-step grid

    # Module default: alpha = ones(class_num, 1).  Gathered but unused in the
    # PyTorch forward, so it never enters the loss.
    alpha = jnp.ones((class_num, 1), dtype=jnp.float32)

    key = jax.random.PRNGKey(0)
    kx, kt = jax.random.split(key)
    inputs = jax.random.normal(kx, (N, class_num), dtype=jnp.float32)
    targets = jax.random.randint(kt, (N,), 0, class_num, dtype=jnp.int32)

    # small tile so the demo runs several grid steps (default tile_n=4096 for real sizes)
    loss = focal_loss(inputs, targets, tile_n=128)
    jax.block_until_ready(loss)

    ref = focal_loss_ref(inputs, targets)
    # slightly relaxed vs. exact bitwise match: tiled f32 accumulation order differs
    assert jnp.allclose(loss, ref, rtol=1e-4, atol=1e-5), (loss, ref)

    print("KERNEL_OK")
</pallas_src>

<mosaic_0001>
module attributes {stable_mosaic.version = 11 : i64} {
  func.func @_focal_loss_kernel(%arg0: i32, %arg1: memref<9x128xf32, #tpu.memory_space<vmem>>, %arg2: memref<1x128xi32, #tpu.memory_space<vmem>>, %arg3: memref<1x1xf32, #tpu.memory_space<vmem>>) attributes {dimension_semantics = [#tpu.dimension_semantics<arbitrary>], iteration_bounds = array<i64: 3>, scalar_prefetch = 0 : i64, scratch_operands = 0 : i64, tpu.core_type = #tpu.core_type<tc>, window_params = [{transform_indices = @transform_0, window_bounds = array<i64: 9, 128>}, {transform_indices = @transform_1, window_bounds = array<i64: 1, 128>}, {pipeline_mode = #tpu.pipeline_mode<synchronous>, transform_indices = @transform_2, window_bounds = array<i64: 1, 1>}]} {
    %c0_i32 = arith.constant 0 : i32
    %0 = arith.cmpi eq, %arg0, %c0_i32 : i32
    %1 = arith.extui %0 : i1 to i32
    %c0_i32_0 = arith.constant 0 : i32
    %2 = arith.cmpi ne, %1, %c0_i32_0 : i32
    scf.if %2 {
      %cst_23 = arith.constant 0.000000e+00 : f32
      %65 = vector.broadcast %cst_23 : f32 to vector<1x1xf32>
      %c0_24 = arith.constant 0 : index
      %c0_25 = arith.constant 0 : index
      %66 = vector.load %arg3[%c0_24, %c0_25] : memref<1x1xf32, #tpu.memory_space<vmem>>, vector<1x1xf32>
      tpu.vector_store %arg3[%c0_24, %c0_25], %65 {strides = array<i32>} : memref<1x1xf32, #tpu.memory_space<vmem>>, vector<1x1xf32>,
    } else {
    }
    %c0 = arith.constant 0 : index
    %c0_1 = arith.constant 0 : index
    %3 = vector.load %arg1[%c0, %c0_1] : memref<9x128xf32, #tpu.memory_space<vmem>>, vector<9x128xf32>
    %c0_2 = arith.constant 0 : index
    %c0_3 = arith.constant 0 : index
    %4 = vector.load %arg2[%c0_2, %c0_3] : memref<1x128xi32, #tpu.memory_space<vmem>>, vector<1x128xi32>
    %cst = arith.constant dense<0xFF800000> : vector<128xf32>
    %5 = vector.multi_reduction <maximumf>, %3, %cst [0] : vector<9x128xf32> to vector<128xf32>
    %6 = vector.shape_cast %5 : vector<128xf32> to vector<1x128xf32>
    %7 = vector.broadcast %6 : vector<1x128xf32> to vector<9x128xf32>
    %8 = arith.subf %3, %7 : vector<9x128xf32>
    %9 = math.exp %8 : vector<9x128xf32>
    %cst_4 = arith.constant dense<0.000000e+00> : vector<128xf32>
    %10 = vector.multi_reduction <add>, %9, %cst_4 [0] : vector<9x128xf32> to vector<128xf32>
    %11 = vector.shape_cast %10 : vector<128xf32> to vector<1x128xf32>
    %12 = tpu.reciprocal %11 : vector<1x128xf32> -> vector<1x128xf32>
    %13 = vector.broadcast %12 : vector<1x128xf32> to vector<9x128xf32>
    %14 = arith.mulf %9, %13 : vector<9x128xf32>
    %15 = tpu.iota {dimensions = array<i32: 0>} : vector<9x128xi32>
    %16 = vector.broadcast %4 : vector<1x128xi32> to vector<9x128xi32>
    %17 = arith.cmpi eq, %15, %16 : vector<9x128xi32>
    %18 = arith.mulf %14, %14 : vector<9x128xf32>
    %cst_5 = arith.constant 0.000000e+00 : f32
    %19 = vector.broadcast %cst_5 : f32 to vector<9x128xf32>
    %20 = arith.subf %19, %18 : vector<9x128xf32>
    %cst_6 = arith.constant 1.000000e+00 : f32
    %21 = vector.broadcast %cst_6 : f32 to vector<9x128xf32>
    %22 = arith.subf %21, %14 : vector<9x128xf32>
    %cst_7 = arith.constant 9.99999993E-9 : f32
    %23 = vector.broadcast %cst_7 : f32 to vector<9x128xf32>
    %24 = arith.addf %22, %23 : vector<9x128xf32>
    %25 = math.log %24 : vector<9x128xf32>
    %26 = arith.mulf %20, %25 : vector<9x128xf32>
    %cst_8 = arith.constant 0.000000e+00 : f32
    %27 = vector.broadcast %cst_8 : f32 to vector<9x128xf32>
    %28 = arith.select %17, %27, %26 : vector<9x128xi1>, vector<9x128xf32>
    %cst_9 = arith.constant dense<0.000000e+00> : vector<128xf32>
    %29 = vector.multi_reduction <add>, %28, %cst_9 [0] : vector<9x128xf32> to vector<128xf32>
    %30 = vector.shape_cast %29 : vector<128xf32> to vector<1x128xf32>
    %cst_10 = arith.constant 0.000000e+00 : f32
    %31 = vector.broadcast %cst_10 : f32 to vector<9x128xf32>
    %32 = arith.select %17, %14, %31 : vector<9x128xi1>, vector<9x128xf32>
    %cst_11 = arith.constant dense<0.000000e+00> : vector<128xf32>
    %33 = vector.multi_reduction <add>, %32, %cst_11 [0] : vector<9x128xf32> to vector<128xf32>
    %34 = vector.shape_cast %33 : vector<128xf32> to vector<1x128xf32>
    %cst_12 = arith.constant 1.000000e+00 : f32
    %35 = vector.broadcast %cst_12 : f32 to vector<1x128xf32>
    %36 = arith.subf %35, %34 : vector<1x128xf32>
    %37 = arith.mulf %36, %36 : vector<1x128xf32>
    %cst_13 = arith.constant 0.000000e+00 : f32
    %38 = vector.broadcast %cst_13 : f32 to vector<1x128xf32>
    %39 = arith.subf %38, %37 : vector<1x128xf32>
    %cst_14 = arith.constant 9.99999993E-9 : f32
    %40 = vector.broadcast %cst_14 : f32 to vector<1x128xf32>
    %41 = arith.addf %34, %40 : vector<1x128xf32>
    %42 = math.log %41 : vector<1x128xf32>
    %43 = arith.mulf %39, %42 : vector<1x128xf32>
    %44 = tpu.iota {dimensions = array<i32: 1>} : vector<1x128xi32>
    %c128_i32 = arith.constant 128 : i32
    %45 = arith.muli %arg0, %c128_i32 : i32
    %46 = vector.broadcast %45 : i32 to vector<1x128xi32>
    %47 = arith.addi %44, %46 : vector<1x128xi32>
    %c300_i32 = arith.constant 300 : i32
    %48 = vector.broadcast %c300_i32 : i32 to vector<1x128xi32>
    %49 = arith.cmpi slt, %47, %48 : vector<1x128xi32>
    %cst_15 = arith.constant 4.16666677E-4 : f32
    %50 = vector.broadcast %cst_15 : f32 to vector<1x128xf32>
    %51 = arith.mulf %30, %50 : vector<1x128xf32>
    %cst_16 = arith.constant 0.00333333341 : f32
    %52 = vector.broadcast %cst_16 : f32 to vector<1x128xf32>
    %53 = arith.mulf %43, %52 : vector<1x128xf32>
    %54 = arith.addf %51, %53 : vector<1x128xf32>
    %cst_17 = arith.constant 0.000000e+00 : f32
    %55 = vector.broadcast %cst_17 : f32 to vector<1x128xf32>
    %56 = arith.select %49, %54, %55 : vector<1x128xi1>, vector<1x128xf32>
    %c0_18 = arith.constant 0 : index
    %c0_19 = arith.constant 0 : index
    %57 = vector.load %arg3[%c0_18, %c0_19] : memref<1x1xf32, #tpu.memory_space<vmem>>, vector<1x1xf32>
    %58 = vector.shape_cast %56 : vector<1x128xf32> to vector<1x1x128xf32>
    %cst_20 = arith.constant dense<0.000000e+00> : vector<1xf32>
    %59 = vector.multi_reduction <add>, %58, %cst_20 [1, 2] : vector<1x1x128xf32> to vector<1xf32>
    %60 = vector.shape_cast %59 : vector<1xf32> to vector<1x1x1xf32>
    %61 = vector.extract %60[0, 0, 0] : f32 from vector<1x1x1xf32>
    %62 = vector.broadcast %61 : f32 to vector<1x1xf32>
    %63 = arith.addf %57, %62 : vector<1x1xf32>
    %c0_21 = arith.constant 0 : index
    %c0_22 = arith.constant 0 : index
    %64 = vector.load %arg3[%c0_21, %c0_22] : memref<1x1xf32, #tpu.memory_space<vmem>>, vector<1x1xf32>
    tpu.vector_store %arg3[%c0_21, %c0_22], %63 {strides = array<i32>} : memref<1x1xf32, #tpu.memory_space<vmem>>, vector<1x1xf32>,
    return
  }
  func.func @transform_0(%arg0: i32) -> (i32, i32) {
    %c0_i32 = arith.constant 0 : i32
    %c0_i32_0 = arith.constant 0 : i32
    return %c0_i32, %arg0 : i32, i32
  }
  func.func @transform_1(%arg0: i32) -> (i32, i32) {
    %c0_i32 = arith.constant 0 : i32
    %c0_i32_0 = arith.constant 0 : i32
    return %c0_i32, %arg0 : i32, i32
  }
  func.func @transform_2(%arg0: i32) -> (i32, i32) {
    %c0_i32 = arith.constant 0 : i32
    %c0_i32_0 = arith.constant 0 : i32
    %c0_i32_1 = arith.constant 0 : i32
    return %c0_i32, %c0_i32_0 : i32, i32
  }
}

</mosaic_0001>

<bundles_post_ra>
// kernel: tpu_custom_call.1
= control target key start
LH: loop header
LB: loop body
LE: loop exit
PB: predicated region body
PF: predicated region fallthrough
CT: control target
= control target key end

     0   :  { %7 = vsyncpa [#allocation3], 0  ;;  %s761_s0 = inlined_call_operand.hbm [shape: f32[9,384], index: 0, kind: input, shape index: {}]   ;;  %s762_s1 = inlined_call_operand.hbm [shape: s32[1,384], index: 1, kind: input, shape index: {}]   ;;  %s763_s2 = inlined_call_operand.hbm [shape: f32[1,1], index: 2, kind: output, shape index: {}]  }
   0x1   :  { %9 = vsyncpa [#allocation3 + $0x1], 0 }
   0x2   :  { %10 = vsyncpa [#allocation6], 0 }
   0x3   :  { %12 = vsyncpa [#allocation6 + $0x1], 0 }
   0x4   :  { %13 = vsyncpa [#allocation4], 0  ;;  %s619_s9 = smov 0   ;;  %s621_s10 = smov 0  }
   0x5   :  { %s623_s11 = smov 0   ;;  %s625_s12 = smov 0  }
   0x6 LB: > { %s638_s13 = sadd.s32 4294967295, %s597_s12   ;;  %s641_s14 = sadd.s32 1, %s597_s12   ;;  %s597_s12 = sphi %s625_s12, %s771_s12   ;;  %s593_s11 = sphi %s623_s11, %s770_s11   ;;  %s589_s10 = sphi %s621_s10, %s769_s10   ;;  %s585_s9 = sphi %s619_s9, %s768_s9  }
   0x7   : > { %s23_s15 = ssub.s32 %s597_s12, %s641_s14  ;;  %s26_s16 = sadd.s32 1, %s593_s11 }
   0x8   : > { %p24_p0 = scmp.eq.s32.totalorder %s23_s15, 0  ;;  %p33_p1 = scmp.ne.s32.totalorder %s593_s11, %s589_s10 }
   0x9   : > { %p34_p2 = scmp.eq.s32.totalorder %s597_s12, 0  ;;  %p39_p3 = scmp.ne.s32.totalorder %s589_s10, %s585_s9 }
   0xa   : > { %s651_s17 = scalar_select %p24_p0, %s593_s11, %s26_s16  }
   0xb   : > { %p653_p4 = por %p34_p2, %p33_p1  ;;  %p40_p5 = scmp.eq.s32.totalorder %s638_s13, 0 }
   0xc   : > { %p414_p6 = scmp.lt.s32.totalorder %s597_s12, 3  ;;  %s664_s20 = sand.u32 1, %s593_s11  }
   0xd   : > { %p659_p7 = por %p40_p5, %p39_p3  ;;  %s387_s21 = sshll.u32 %s664_s20, 4 }
   0xe   : > { %s388_s22 = sshll.u32 %s597_s12, 3  ;;  %s114_s26 = scalar_lea.vmem [#allocation2], %s387_s21 }
   0xf   : > { %s118_s25 = scalar_lea.hbm %s761_s0, %s388_s22  ;;  %s121_s27 = sshll.u32 %s114_s26, 4  ;;  %s122_s27 = int_to_ptr.vmem [resolvable:$true] %s121_s27 }
  0x10   : > { %s119_s28 = sshll.u32 %s118_s25, 4  ;;  %p673_p8 = pnand %p414_p6, %p653_p4  ;;  %s120_s28 = int_to_ptr.hbm [resolvable:$true] %s119_s28 }
  0x11   : > { %s111_s30 = scalar_lea.sflag [#allocation3], %s664_s20  ;;  %s467_s3 = sshra.s32 %s120_s28, 4  ;;  %s468_s3 = int_to_ptr.hbm [resolvable:$true] %s467_s3 }
  0x12   : > { %s469_s4 = scalar_lea.hbm %s468_s3, 16  ;;  %p471_p10 = pneg %p673_p8 }
  0x13   : > { %p470_p9 = scmp.ne.s32.totalorder %s468_s3, %s469_s4  ;;  %s474_s7 = scalar_lea.hbm %s761_s0, 48 }
  0x14   : > { %p475_p13 = scmp.lt.s32.totalorder %s468_s3, %s761_s0  ;;  %p476_p0 = scmp.lt.s32.totalorder %s474_s7, %s469_s4 }
  0x15   : > { %p472_p11 = pnand %p471_p10, %p470_p9 }
  0x16   : > { %p477_p1 = por %p476_p0, %p475_p13 }
  0x17   : > { %p473_p12 = pneg %p472_p11 }
  0x19   : > { %p478_p2 = pnand %p477_p1, %p473_p12 }
  0x1b   : > { %481 = shalt.err (!%p478_p2)
}
  0x1c   : > { %s599_s15 = smov 384   ;;  %s600_s16 = smov 128  }
  0x1d   : > { %s601_s18 = smov 8   ;;  %p389_p3 = scmp.ge.s32.totalorder %s597_s12, 1 }
  0x1e   : > { %410 = dma.hbm_to_vmem [thread:$0]  (!%p673_p8), %s120_s28, 256, %s122_s27, %s111_s30, %s599_s15, %s600_s16, %s601_s18  }
  0x1f   : > { %p146_p4 = scmp.lt.s32.totalorder %s597_s12, 4  ;;  %s137_s24 = scalar_lea.hbm %s762_s1, %s597_s12 }
  0x20   : > { %s139_s25 = sshll.u32 %s137_s24, 4  ;;  %s134_s26 = scalar_lea.vmem [#allocation5], %s664_s20  ;;  %s140_s25 = int_to_ptr.hbm [resolvable:$true] %s139_s25 }
  0x21   : > { %p693_p5 = pnand %p389_p3, %p146_p4  ;;  %s141_s3 = sshll.u32 %s134_s26, 4  ;;  %s142_s3 = int_to_ptr.vmem [resolvable:$true] %s141_s3 }
  0x22   : > { %s132_s4 = scalar_lea.sflag [#allocation6], %s664_s20  ;;  %s497_s5 = sshra.s32 %s140_s25, 4  ;;  %s498_s5 = int_to_ptr.hbm [resolvable:$true] %s497_s5 }
  0x23   : > { %s499_s6 = scalar_lea.hbm %s498_s5, 1  ;;  %s504_s30 = scalar_lea.hbm %s762_s1, 3 }
  0x24   : > { %p500_p6 = scmp.ne.s32.totalorder %s498_s5, %s499_s6  ;;  %p505_p12 = scmp.lt.s32.totalorder %s498_s5, %s762_s1 }
  0x25   : > { %p506_p13 = scmp.lt.s32.totalorder %s504_s30, %s499_s6 }
  0x26   : > { %p502_p9 = pnand %p500_p6, %p471_p10 }
  0x27   : > { %p507_p0 = por %p506_p13, %p505_p12 }
  0x28   : > { %p503_p11 = pneg %p502_p9 }
  0x2a   : > { %p508_p1 = pnand %p507_p0, %p503_p11 }
  0x2c   : > { %511 = shalt.err (!%p508_p1)
}
  0x2d   : > { %413 = dma.hbm_to_vmem [thread:$0]  (!%p673_p8), %s140_s25, 16, %s142_s3, %s132_s4  }
  0x2e   : > { %150 = sbr.rel (%p693_p5) target bundleno = 348 (0x15c), region = 28  ;;  %s717_s20 = sand.u32 (!%p693_p5), 1, %s589_s10  }
  0x2f   : > { %s390_s8 = sshll.u32 (!%p693_p5), %s717_s20, 4  ;;  %s153_s9 = scalar_lea.sflag (!%p693_p5), [#allocation3], %s717_s20 }
  0x30   : > { %s156_s15 = scalar_lea.vmem (!%p693_p5), [#allocation2], %s390_s8 }
  0x33   : > { %572 = dma.done.wait (%p659_p7), %s153_s9, 256  }
  0x34   : > { %574 = vsyncadd (%p659_p7), %s153_s9, 4294967040  ;;  %s163_s29 = scalar_lea.sflag [#allocation6], %s717_s20  ;;  %s165_s16 = scalar_lea.vmem [#allocation5], %s717_s20 }
  0x35   : > { %576 = dma.done.wait (%p659_p7), %s163_s29, 16  }
  0x36   : > { %578 = vsyncadd (%p659_p7), %s163_s29, 4294967280  ;;  %p391_p8 = scmp.ne.s32.totalorder %s638_s13, 0 }
  0x38   : > { %189 = sbr.rel (%p391_p8) target bundleno = 63 (0x3f), region = 40 }
  0x3d   : > { %vm190_vm0 = vcmask 0   ;;  %v602_v0 = vmov 0.0  }
  0x3e   : > { %191 = vst.msk [vmem:[#allocation7] sm:$0x1] %vm190_vm0, %v602_v0 }
  0x3f PF: > { %v192_v1 = vld [vmem:[%s156_s15] sm:$0xff]  ;;  %v193_v2 = vld [vmem:[%s156_s15 + $0x8] sm:$0x1]  ;;  %vm195_vm1 = vcmask 1040384   ;;  %v234_v25 = vlaneseq  ;;  %s392_s19 = sshll.u32 %s638_s13, 7  ;;  %s603_s18 = smov [#allocation7]  }
  0x40   : > { %v196_v3 = vsel %vm195_vm1, %v193_v2, -inf  ;;  %v454_v36 = vld [vmem:[%s165_s16] ss:$0 sm:$0xff]  ;;  %s312_s21 = sshll.u32 %s603_s18, 4  ;;  %s314_s24 = sshll.u32 %s763_s2, 4  ;;  %vm304_vm9 = vcmask 0   ;;  %s313_s21 = int_to_ptr.vmem [resolvable:$true] %s312_s21  ;;  %s315_s24 = int_to_ptr.hbm [resolvable:$true] %s314_s24 }
  0x41   : > { %v197_v4 = vmax.f32 %v192_v1, %v196_v3  ;;  %v235_v29 = vshrl.u32 %v234_v25, 7  ;;  %p415_p7 = scmp.eq.s32.totalorder %s638_s13, 2 }
  0x43   : > { %v198_v5 = vrot.slane %v197_v4, 4  ;;  %v236_v35 = vadd.s32 8, %v235_v29  ;;  %vm238_vm6 = vcmp.eq.s32.totalorder %v235_v29, %v454_v36 }
  0x45   : > { %v199_v6 = vmax.f32 %v197_v4, %v198_v5  ;;  %vm239_vm7 = vcmp.eq.s32.totalorder %v236_v35, %v454_v36 }
  0x47   : > { %v200_v7 = vrot.slane %v199_v6, 2 }
  0x49   : > { %v201_v8 = vmax.f32 %v199_v6, %v200_v7 }
  0x4b   : > { %v202_v9 = vrot.slane %v201_v8, 1 }
  0x4d   : > { %v203_v10 = vmax.f32 %v201_v8, %v202_v9 }
  0x4f   : > { %v204_v11 = vsub.f32 %v192_v1, %v203_v10  ;;  %v205_v12 = vsub.f32 %v193_v2, %v203_v10 }
  0x51   : > { %v206_v13 = vmul.f32 1.442695, %v204_v11  ;;  %v208_v14 = vmul.f32 1.442695, %v205_v12  ;;  %v282_v12 = vand.u32 127, %v234_v25 }
  0x53   : > { %455 = vpow2.f32 %v206_v13 }
  0x54   : > { %457 = vpow2.f32 %v208_v14 }
  0x59   : > { %v456_v15 = vpop.eup %455 }
  0x5a   : > { %v458_v16 = vpop.eup %457 }
  0x5b   : > { %v210_v17 = vsel %vm195_vm1, %v458_v16, 0.0 }
  0x5c   : > { %v211_v18 = vadd.f32 %v456_v15, %v210_v17 }
  0x5e   : > { %v212_v19 = vrot.slane %v211_v18, 4 }
  0x60   : > { %v213_v20 = vadd.f32 %v212_v19, %v211_v18 }
  0x62   : > { %v214_v21 = vrot.slane %v213_v20, 2 }
  0x64   : > { %v215_v22 = vadd.f32 %v214_v21, %v213_v20 }
  0x66   : > { %v216_v23 = vrot.slane %v215_v22, 1 }
  0x68   : > { %v217_v24 = vadd.f32 %v216_v23, %v215_v22 }
  0x6a   : > { %459 = vrcp.f32 %v217_v24  ;;  %v229_v28 = vand.u32 2147483648, %v217_v24  ;;  %vm223_vm2 = vweird.f32 %v217_v24  ;;  %v227_v31 = vand.u32 2147483647, %v217_v24 }
  0x6c   : > { %v230_v33 = vor.u32 1.1754944e-38, %v229_v28  ;;  %vm228_vm5 = vcmp.eq.f32.partialorder %v227_v31, 8.507059e+37 }
  0x70   : > { %v460_v26 = vpop.eup %459 }
  0x71   : > { %v219_v27 = vmul.f32 %v460_v26, %v217_v24  ;;  %vm224_vm3 = vweird.f32 %v460_v26 }
  0x72   : > { %vm225_vm4 = vmor %vm223_vm2, %vm224_vm3 }
  0x73   : > { %v220_v30 = vsub.f32 1.0, %v219_v27 }
  0x75   : > { %v221_v32 = vmul.f32 %v460_v26, %v220_v30 }
  0x77   : > { %v222_v34 = vadd.f32 %v460_v26, %v221_v32 }
  0x79   : > { %v226_v37 = vsel %vm225_vm4, %v460_v26, %v222_v34 }
  0x7a   : > { %v231_v38 = vsel %vm228_vm5, %v230_v33, %v226_v37  ;;  %v291_v33 = vld [vmem:[#allocation7] sm:$0x1] }
  0x7b   : > { %v232_v39 = vmul.f32 %v456_v15, %v231_v38  ;;  %v233_v40 = vmul.f32 %v458_v16, %v231_v38  ;;  %v284_v15 = vstv %s392_s19 }
  0x7c   : > { %v285_v19 = vadd.s32 %v284_v15, %v282_v12 }
  0x7d   : > { %v244_v41 = vsub.f32 1.0, %v232_v39  ;;  %v245_v42 = vsub.f32 1.0, %v233_v40  ;;  %v264_v43 = vsel %vm238_vm6, %v232_v39, 0.0  ;;  %v265_v44 = vsel %vm239_vm7, %v233_v40, 0.0 }
  0x7e   : > { %v266_v47 = vsel %vm195_vm1, %v265_v44, 0.0  ;;  %v240_v49 = vmul.f32 %v232_v39, %v232_v39  ;;  %v241_v50 = vmul.f32 %v233_v40, %v233_v40  ;;  %vm286_vm8 = vcmp.lt.s32.totalorder %v285_v19, 300 }
  0x7f   : > { %v246_v45 = vadd.f32 1e-08, %v244_v41  ;;  %v247_v46 = vadd.f32 1e-08, %v245_v42  ;;  %v267_v48 = vadd.f32 %v266_v47, %v264_v43 }
  0x80   : > { %v242_v53 = vsub.f32 0.0, %v240_v49  ;;  %v243_v55 = vsub.f32 0.0, %v241_v50 }
  0x81   : > { %461 = vlog2.f32 %v246_v45  ;;  %v268_v51 = vrot.slane %v267_v48, 4 }
  0x82   : > { %463 = vlog2.f32 %v247_v46 }
  0x83   : > { %v269_v52 = vadd.f32 %v268_v51, %v267_v48 }
  0x85   : > { %v270_v56 = vrot.slane %v269_v52, 2 }
  0x87   : > { %v462_v54 = vpop.eup %461  ;;  %v271_v60 = vadd.f32 %v270_v56, %v269_v52 }
  0x88   : > { %v464_v57 = vpop.eup %463  ;;  %v249_v58 = vmul.f32 0.6931472, %v462_v54 }
  0x89   : > { %v251_v59 = vmul.f32 0.6931472, %v464_v57  ;;  %v272_v63 = vrot.slane %v271_v60, 1 }
  0x8a   : > { %v252_v61 = vmul.f32 %v249_v58, %v242_v53 }
  0x8b   : > { %v253_v62 = vmul.f32 %v251_v59, %v243_v55  ;;  %v273_v2 = vadd.f32 %v272_v63, %v271_v60 }
  0x8c   : > { %v254_v0 = vsel %vm238_vm6, 0.0, %v252_v61 }
  0x8d   : > { %v255_v1 = vsel %vm239_vm7, 0.0, %v253_v62  ;;  %v274_v5 = vsub.f32 1.0, %v273_v2  ;;  %v277_v6 = vadd.f32 1e-08, %v273_v2 }
  0x8e   : > { %v256_v3 = vsel %vm195_vm1, %v255_v1, 0.0 }
  0x8f   : > { %v257_v4 = vadd.f32 %v256_v3, %v254_v0  ;;  %465 = vlog2.f32 %v277_v6  ;;  %v275_v8 = vmul.f32 %v274_v5, %v274_v5 }
  0x91   : > { %v258_v7 = vrot.slane %v257_v4, 4  ;;  %v276_v11 = vsub.f32 0.0, %v275_v8 }
  0x93   : > { %v259_v9 = vadd.f32 %v258_v7, %v257_v4 }
  0x95   : > { %v260_v10 = vrot.slane %v259_v9, 2  ;;  %v466_v13 = vpop.eup %465 }
  0x96   : > { %v279_v16 = vmul.f32 0.6931472, %v466_v13 }
  0x97   : > { %v261_v14 = vadd.f32 %v260_v10, %v259_v9 }
  0x98   : > { %v280_v18 = vmul.f32 %v279_v16, %v276_v11 }
  0x99   : > { %v262_v17 = vrot.slane %v261_v14, 1 }
  0x9a   : > { %v288_v21 = vmul.f32 0.0033333334, %v280_v18 }
  0x9b   : > { %v263_v20 = vadd.f32 %v262_v17, %v261_v14 }
  0x9d   : > { %v287_v22 = vmul.f32 0.00041666668, %v263_v20 }
  0x9f   : > { %v289_v23 = vadd.f32 %v288_v21, %v287_v22 }
  0xa1   : > { %v290_v24 = vsel %vm286_vm8, %v289_v23, 0.0 }
  0xa2   : > { %v292_v26 = vsel %vm195_vm1, %v290_v24, 0.0 }
  0xa3   : > { %293 = vadd.xlane.f32.xlu0 %v292_v26 }
 0x116   : > { %v294_v27 = vpop.xlane.xlu0 %293 }
 0x117   : > { %v295_v28 = vrot.slane %v294_v27, 4 }
 0x119   : > { %v296_v25 = vadd.f32 %v295_v28, %v294_v27 }
 0x11b   : > { %v297_v29 = vrot.slane %v296_v25, 2 }
 0x11d   : > { %v298_v30 = vadd.f32 %v297_v29, %v296_v25 }
 0x11f   : > { %v299_v31 = vrot.slane %v298_v30, 1 }
 0x121   : > { %v300_v32 = vadd.f32 %v299_v31, %v298_v30 }
 0x123   : > { %397 = vpush %v300_v32 }
 0x154   : > { %s398_s25 = spop %397 }
 0x155   : > { %v302_v34 = vstv %s398_s25 }
 0x156   : > { %v303_v35 = vadd.f32 %v302_v34, %v291_v33 }
 0x158   : > { %305 = vst.msk [vmem:[#allocation7] sm:$0x1] %vm304_vm9, %v303_v35 }
 0x159   : > { %404 = dma.vmem_to_hbm [thread:$0]  (%p415_p7), %s313_s21, 16, %s315_s24, [#allocation4]  }
 0x15a   : > { %580 = dma.done.wait (%p415_p7), [#allocation4], 16  }
 0x15b   : > { %582 = vsyncadd (%p415_p7), [#allocation4], 4294967280 }
 0x15c PF: > { %p16_p10 = scmp.ge.s32.totalorder %s641_s14, 5   ;;  %s768_s9 = smov %s589_s10 }
 0x15d   : > { %s769_s10 = smov %s593_s11  ;;  %s770_s11 = smov %s651_s17 }
 0x15e   : > { %s771_s12 = smov %s641_s14  ;;  %18 = sbr.rel (!%p16_p10) target bundleno = 6 (0x6), region = 82 }
 0x163   :  { %328 = vsyncpa [#allocation3], 1 }
 0x164   :  { %330 = vsyncpa [#allocation3 + $0x1], 1 }
 0x165   :  { %331 = vsyncpa [#allocation6], 1 }
 0x166   :  { %333 = vsyncpa [#allocation6 + $0x1], 1 }
 0x167   :  { %334 = vsyncpa [#allocation4], 1 }
 0x168   :  { %336 = vsyncpa [#allocation4 + $0x1], 1 }

</bundles_post_ra>
